<compile_context>
chip_gen: v7x
topology: tpu7x:2x2x1
jax: 0.10.0
libtpu: 0.0.40
codegen_flags: <defaults>
</compile_context>

<pallas_src>
import functools

import jax
import jax.numpy as jnp
from jax import lax
from jax.experimental import pallas as pl
from jax.experimental.pallas import tpu as pltpu


# ---------------------------------------------------------------------------
# Kernel 1: fused per-head QKV projection + q/k softmaxes, head-major output
# ---------------------------------------------------------------------------
def _qkv_head_proj_kernel(x_ref, w_ref, b_ref, o_ref, *, num_heads, scale):
    # x_ref: (C, E)  one gene-row of the input
    # w_ref: (E, Dh) weight slice of projection j;  b_ref: (1, Dh)
    # o_ref: (C, Dh) slot [j, r] of the head-major qkv buffer (dtype = MXU dtype)
    j = pl.program_id(1)          # 0..H-1: q heads, H..2H-1: k heads, 2H..3H-1: v heads
    H = num_heads
    mxu_dtype = o_ref.dtype

    y = jnp.dot(x_ref[...].astype(mxu_dtype), w_ref[...].astype(mxu_dtype),
                preferred_element_type=jnp.float32) + b_ref[...]

    @pl.when(j < H)
    def _():  # q: softmax over head_dim, with D**-0.5 folded into the reciprocal
        m = jnp.max(y, axis=-1, keepdims=True)
        e = jnp.exp(y - m)
        inv = pl.reciprocal(jnp.sum(e, axis=-1, keepdims=True), approx=True)
        o_ref[...] = (e * (inv * scale)).astype(o_ref.dtype)

    @pl.when((j >= H) & (j < 2 * H))
    def _():  # k: softmax over the column (C) axis
        m = jnp.max(y, axis=0, keepdims=True)
        e = jnp.exp(y - m)
        inv = pl.reciprocal(jnp.sum(e, axis=0, keepdims=True), approx=True)
        o_ref[...] = (e * inv).astype(o_ref.dtype)

    @pl.when(j >= 2 * H)
    def _():  # v: plain affine projection
        o_ref[...] = y.astype(o_ref.dtype)


# ---------------------------------------------------------------------------
# Kernel 2: per-head linear attention (softmaxes already applied upstream)
# ---------------------------------------------------------------------------
def _linear_attn_kernel(q_ref, k_ref, v_ref, out_ref, attnw_ref):
    # Head-major, gene-row-batched tiles written by kernel 1:
    #   q_ref: (R, C, Dh)  softmax(head_dim)-normalised and D**-0.5 scaled
    #   k_ref: (R, C, Dh)  softmax over the C axis
    #   v_ref: (R, C, Dh)
    # Outputs: out_ref (R, C, Dh) f32, attnw_ref (C, C) f32.
    R, C, _ = q_ref.shape
    q = q_ref[...]
    k = k_ref[...]
    v = v_ref[...]

    # attn_weights[n, m] = sum_{r, dh} q[r, n, dh] * k[r, m, dh]
    p = jnp.einsum('rnd,rmd->rnm', q, k, preferred_element_type=jnp.float32)   # (R, C, C)
    attnw = jnp.sum(p, axis=0)                                                  # (C, C)
    attnw_ref[...] = attnw

    # out = attn_weights @ v  (== q @ (k^T v) re-associated; avoids the (D, D) context)
    # TODO(synk): switch back to the k^T v "context" formulation when C >> R*Dh.
    aw = jnp.broadcast_to(attnw.astype(q.dtype), (R, C, C))
    out_ref[...] = jnp.einsum('rnm,rmd->rnd', aw, v, preferred_element_type=jnp.float32)


# ---------------------------------------------------------------------------
# Wrapper
# ---------------------------------------------------------------------------
def gene_linear_attention(x, params, num_heads, *, mxu_dtype=jnp.bfloat16):
    """Forward of Gene_Linear_Attention.pred(x) -> (output, attn_weights)."""
    R, C, E = x.shape
    H = num_heads
    Dh = E // H
    D = R * Dh
    scale = float(D) ** -0.5

    (wq, bq), (wk, bk), (wv, bv) = params["q"], params["k"], params["v"]

    # One-time weight re-packing (weights only, negligible): w_heads[s*H + h] = W_s[h*Dh:(h+1)*Dh, :].T
    w_all = jnp.stack([wq, wk, wv], axis=0)                                   # (3, E_out, E_in)
    w_heads = jnp.transpose(w_all.reshape(3, H, Dh, E), (0, 1, 3, 2)).reshape(3 * H, E, Dh)
    b_heads = jnp.stack([bq, bk, bv], axis=0).reshape(3 * H, 1, Dh)

    itemsz = jnp.dtype(mxu_dtype).itemsize

    # ---- Kernel 1: fused QKV projection + softmaxes, head-major output -----------------
    proj_cost = pl.CostEstimate(
        flops=2 * 3 * R * C * E * E,
        transcendentals=2 * R * C * E,
        bytes_accessed=4 * (R * C * E + 3 * E * E + 3 * E) + 3 * R * C * E * itemsz,
    )
    qkvh = pl.pallas_call(
        functools.partial(_qkv_head_proj_kernel, num_heads=H, scale=scale),
        grid=(R, 3 * H),
        in_specs=[
            pl.BlockSpec((None, C, E), lambda r, j: (r, 0, 0)),      # x[r]   (reused across j)
            pl.BlockSpec((None, E, Dh), lambda r, j: (j, 0, 0)),     # W_j
            pl.BlockSpec((None, 1, Dh), lambda r, j: (j, 0, 0)),     # b_j
        ],
        out_specs=pl.BlockSpec((None, None, C, Dh), lambda r, j: (j, r, 0, 0)),
        out_shape=jax.ShapeDtypeStruct((3 * H, R, C, Dh), mxu_dtype),
        compiler_params=pltpu.CompilerParams(
            dimension_semantics=("parallel", "arbitrary"),
            vmem_limit_bytes=32 * 1024 * 1024),
        cost_estimate=proj_cost,
    )(x, w_heads, b_heads)

    # ---- Kernel 2: per-head linear attention -------------------------------------------
    attn_cost = pl.CostEstimate(
        flops=4 * H * C * C * D,
        transcendentals=0,
        bytes_accessed=3 * R * C * E * itemsz + 4 * (H * C * C + R * C * E),
    )
    out_hrcd, attn_w = pl.pallas_call(
        _linear_attn_kernel,
        grid=(H,),
        in_specs=[
            pl.BlockSpec((None, R, C, Dh), lambda h: (h, 0, 0, 0)),           # q head h
            pl.BlockSpec((None, R, C, Dh), lambda h: (H + h, 0, 0, 0)),       # k head h
            pl.BlockSpec((None, R, C, Dh), lambda h: (2 * H + h, 0, 0, 0)),   # v head h
        ],
        out_specs=(pl.BlockSpec((None, R, C, Dh), lambda h: (h, 0, 0, 0)),
                   pl.BlockSpec((None, C, C), lambda h: (h, 0, 0))),
        out_shape=(jax.ShapeDtypeStruct((H, R, C, Dh), jnp.float32),
                   jax.ShapeDtypeStruct((H, C, C), jnp.float32)),
        compiler_params=pltpu.CompilerParams(
            dimension_semantics=("parallel",),
            vmem_limit_bytes=32 * 1024 * 1024),
        cost_estimate=attn_cost,
    )(qkvh, qkvh, qkvh)

    # Final layout fix-up on the smallest tensor: (H, R, C, Dh) -> (R, C, E).
    # TODO(synk): for very large C, tile the query (C) axis of kernel 2 and keep k/v resident.
    out = jnp.transpose(out_hrcd, (1, 2, 0, 3)).reshape(R, C, E)
    return out, attn_w


# ---------------------------------------------------------------------------
# Deterministic parameter init (PyTorch nn.Linear-like uniform bounds)
# ---------------------------------------------------------------------------
def init_params(key, embed_dim):
    bound = embed_dim ** -0.5
    keys = jax.random.split(key, 6)

    def lin(kw, kb):
        w = jax.random.uniform(kw, (embed_dim, embed_dim), jnp.float32, -bound, bound)
        b = jax.random.uniform(kb, (embed_dim,), jnp.float32, -bound, bound)
        return w, b

    return {"q": lin(keys[0], keys[1]),
            "k": lin(keys[2], keys[3]),
            "v": lin(keys[4], keys[5])}


# ---------------------------------------------------------------------------
# Pure-JAX reference mirroring the PyTorch `pred` path
# ---------------------------------------------------------------------------
def reference(x, params, num_heads):
    R, C, E = x.shape
    H = num_heads
    Dh = E // H
    D = R * Dh
    hp = lax.Precision.HIGHEST

    def lin(t, w, b):
        return jnp.einsum("re,oe->ro", t.reshape(-1, E), w, precision=hp) + b

    q = lin(x, *params["q"]).reshape(R, C, H, Dh)
    k = lin(x, *params["k"]).reshape(R, C, H, Dh)
    v = lin(x, *params["v"]).reshape(R, C, H, Dh)

    q = jax.nn.softmax(jnp.transpose(q, (2, 1, 0, 3)), axis=-1).reshape(H, C, D)
    k = jnp.transpose(k, (2, 1, 0, 3)).reshape(H, C, D)
    v = jnp.transpose(v, (2, 1, 0, 3)).reshape(H, C, D)

    k = jax.nn.softmax(k, axis=-2)
    q = q * D ** (-0.5)
    attn_w = jnp.einsum("hnd,hmd->hnm", q, k, precision=hp)
    context = jnp.einsum("hnd,hne->hde", k, v, precision=hp)
    out = jnp.einsum("hnd,hde->hne", q, context, precision=hp)
    out = jnp.transpose(out.reshape(H, C, R, Dh), (2, 1, 0, 3)).reshape(R, C, E)
    return out, attn_w


if __name__ == "__main__":
    R, C, E, H = 4, 8, 32, 4   # num_rows, num_cols, embed_dim, num_heads

    key = jax.random.PRNGKey(0)
    kx, kp = jax.random.split(key)
    x = jax.random.normal(kx, (R, C, E), jnp.float32)
    params = init_params(kp, E)

    out, attn_w = gene_linear_attention(x, params, H)
    jax.block_until_ready((out, attn_w))

    ref_out, ref_attn = reference(x, params, H)
    assert out.shape == (R, C, E), out.shape
    assert attn_w.shape == (H, C, C), attn_w.shape
    assert bool(jnp.all(jnp.isfinite(out))) and bool(jnp.all(jnp.isfinite(attn_w)))
    # bf16 MXU operands + approx reciprocal => slightly looser tolerance than pure f32.
    assert jnp.allclose(out, ref_out, atol=2e-2, rtol=2e-2), \
        float(jnp.max(jnp.abs(out - ref_out)))
    assert jnp.allclose(attn_w, ref_attn, atol=2e-2, rtol=2e-2), \
        float(jnp.max(jnp.abs(attn_w - ref_attn)))

    print("KERNEL_OK")
</pallas_src>

<mosaic_0001>
module attributes {stable_mosaic.version = 11 : i64} {
  func.func @_qkv_head_proj_kernel(%arg0: i32, %arg1: i32, %arg2: memref<1x8x32xf32, #tpu.memory_space<vmem>>, %arg3: memref<1x32x8xf32, #tpu.memory_space<vmem>>, %arg4: memref<1x1x8xf32, #tpu.memory_space<vmem>>, %arg5: memref<1x1x8x8xbf16, #tpu.memory_space<vmem>>) attributes {dimension_semantics = [#tpu.dimension_semantics<parallel>, #tpu.dimension_semantics<arbitrary>], iteration_bounds = array<i64: 4, 12>, scalar_prefetch = 0 : i64, scratch_operands = 0 : i64, tpu.core_type = #tpu.core_type<tc>, window_params = [{transform_indices = @transform_0, window_bounds = array<i64: 1, 8, 32>}, {transform_indices = @transform_1, window_bounds = array<i64: 1, 32, 8>}, {transform_indices = @transform_2, window_bounds = array<i64: 1, 1, 8>}, {transform_indices = @transform_3, window_bounds = array<i64: 1, 1, 8, 8>}]} {
    %c0 = arith.constant 0 : index
    %c0_0 = arith.constant 0 : index
    %c0_1 = arith.constant 0 : index
    %0 = vector.load %arg2[%c0, %c0_0, %c0_1] : memref<1x8x32xf32, #tpu.memory_space<vmem>>, vector<1x8x32xf32>
    %1 = vector.shape_cast %0 : vector<1x8x32xf32> to vector<8x32xf32>
    %2 = arith.truncf %1 : vector<8x32xf32> to vector<8x32xbf16>
    %c0_2 = arith.constant 0 : index
    %c0_3 = arith.constant 0 : index
    %c0_4 = arith.constant 0 : index
    %3 = vector.load %arg3[%c0_2, %c0_3, %c0_4] : memref<1x32x8xf32, #tpu.memory_space<vmem>>, vector<1x32x8xf32>
    %4 = vector.shape_cast %3 : vector<1x32x8xf32> to vector<32x8xf32>
    %5 = arith.truncf %4 : vector<32x8xf32> to vector<32x8xbf16>
    %cst = arith.constant dense<0.000000e+00> : vector<8x8xf32>
    %6 = tpu.matmul %2, %5, %cst {dimension_numbers = #tpu.dot_dimension_numbers<[1], [0], [0], [1], [0, 0, 1, 1], [], []>} : vector<8x32xbf16>, vector<32x8xbf16>, vector<8x8xf32> -> vector<8x8xf32>
    %c0_5 = arith.constant 0 : index
    %c0_6 = arith.constant 0 : index
    %c0_7 = arith.constant 0 : index
    %7 = vector.load %arg4[%c0_5, %c0_6, %c0_7] : memref<1x1x8xf32, #tpu.memory_space<vmem>>, vector<1x1x8xf32>
    %8 = vector.shape_cast %7 : vector<1x1x8xf32> to vector<1x8xf32>
    %9 = vector.broadcast %8 : vector<1x8xf32> to vector<8x8xf32>
    %10 = arith.addf %6, %9 : vector<8x8xf32>
    %c4_i32 = arith.constant 4 : i32
    %11 = arith.cmpi slt, %arg1, %c4_i32 : i32
    %12 = arith.extui %11 : i1 to i32
    %c0_i32 = arith.constant 0 : i32
    %13 = arith.cmpi ne, %12, %c0_i32 : i32
    scf.if %13 {
      %cst_12 = arith.constant dense<0xFF800000> : vector<8xf32>
      %22 = vector.multi_reduction <maximumf>, %10, %cst_12 [1] : vector<8x8xf32> to vector<8xf32>
      %23 = vector.shape_cast %22 : vector<8xf32> to vector<8x1xf32>
      %24 = vector.broadcast %23 : vector<8x1xf32> to vector<8x8xf32>
      %25 = arith.subf %10, %24 : vector<8x8xf32>
      %26 = math.exp %25 : vector<8x8xf32>
      %cst_13 = arith.constant dense<0.000000e+00> : vector<8xf32>
      %27 = vector.multi_reduction <add>, %26, %cst_13 [1] : vector<8x8xf32> to vector<8xf32>
      %28 = vector.shape_cast %27 : vector<8xf32> to vector<8x1xf32>
      %29 = tpu.reciprocal %28 {approx = true} : vector<8x1xf32> -> vector<8x1xf32>
      %cst_14 = arith.constant 0.176776692 : f32
      %30 = vector.broadcast %cst_14 : f32 to vector<8x1xf32>
      %31 = arith.mulf %29, %30 : vector<8x1xf32>
      %32 = vector.broadcast %31 : vector<8x1xf32> to vector<8x8xf32>
      %33 = arith.mulf %26, %32 : vector<8x8xf32>
      %34 = arith.truncf %33 : vector<8x8xf32> to vector<8x8xbf16>
      %c0_15 = arith.constant 0 : index
      %c0_16 = arith.constant 0 : index
      %c0_17 = arith.constant 0 : index
      %c0_18 = arith.constant 0 : index
      %35 = vector.load %arg5[%c0_15, %c0_16, %c0_17, %c0_18] : memref<1x1x8x8xbf16, #tpu.memory_space<vmem>>, vector<1x1x8x8xbf16>
      %36 = vector.shape_cast %35 : vector<1x1x8x8xbf16> to vector<8x8xbf16>
      %37 = vector.shape_cast %34 : vector<8x8xbf16> to vector<1x1x8x8xbf16>
      tpu.vector_store %arg5[%c0_15, %c0_16, %c0_17, %c0_18], %37 {strides = array<i32>} : memref<1x1x8x8xbf16, #tpu.memory_space<vmem>>, vector<1x1x8x8xbf16>,
    } else {
    }
    %c4_i32_8 = arith.constant 4 : i32
    %14 = arith.cmpi sge, %arg1, %c4_i32_8 : i32
    %c8_i32 = arith.constant 8 : i32
    %15 = arith.cmpi slt, %arg1, %c8_i32 : i32
    %16 = arith.andi %14, %15 : i1
    %17 = arith.extui %16 : i1 to i32
    %c0_i32_9 = arith.constant 0 : i32
    %18 = arith.cmpi ne, %17, %c0_i32_9 : i32
    scf.if %18 {
      %cst_12 = arith.constant dense<0xFF800000> : vector<8xf32>
      %22 = vector.multi_reduction <maximumf>, %10, %cst_12 [0] : vector<8x8xf32> to vector<8xf32>
      %23 = vector.shape_cast %22 : vector<8xf32> to vector<1x8xf32>
      %24 = vector.broadcast %23 : vector<1x8xf32> to vector<8x8xf32>
      %25 = arith.subf %10, %24 : vector<8x8xf32>
      %26 = math.exp %25 : vector<8x8xf32>
      %cst_13 = arith.constant dense<0.000000e+00> : vector<8xf32>
      %27 = vector.multi_reduction <add>, %26, %cst_13 [0] : vector<8x8xf32> to vector<8xf32>
      %28 = vector.shape_cast %27 : vector<8xf32> to vector<1x8xf32>
      %29 = tpu.reciprocal %28 {approx = true} : vector<1x8xf32> -> vector<1x8xf32>
      %30 = vector.broadcast %29 : vector<1x8xf32> to vector<8x8xf32>
      %31 = arith.mulf %26, %30 : vector<8x8xf32>
      %32 = arith.truncf %31 : vector<8x8xf32> to vector<8x8xbf16>
      %c0_14 = arith.constant 0 : index
      %c0_15 = arith.constant 0 : index
      %c0_16 = arith.constant 0 : index
      %c0_17 = arith.constant 0 : index
      %33 = vector.load %arg5[%c0_14, %c0_15, %c0_16, %c0_17] : memref<1x1x8x8xbf16, #tpu.memory_space<vmem>>, vector<1x1x8x8xbf16>
      %34 = vector.shape_cast %33 : vector<1x1x8x8xbf16> to vector<8x8xbf16>
      %35 = vector.shape_cast %32 : vector<8x8xbf16> to vector<1x1x8x8xbf16>
      tpu.vector_store %arg5[%c0_14, %c0_15, %c0_16, %c0_17], %35 {strides = array<i32>} : memref<1x1x8x8xbf16, #tpu.memory_space<vmem>>, vector<1x1x8x8xbf16>,
    } else {
    }
    %c8_i32_10 = arith.constant 8 : i32
    %19 = arith.cmpi sge, %arg1, %c8_i32_10 : i32
    %20 = arith.extui %19 : i1 to i32
    %c0_i32_11 = arith.constant 0 : i32
    %21 = arith.cmpi ne, %20, %c0_i32_11 : i32
    scf.if %21 {
      %22 = arith.truncf %10 : vector<8x8xf32> to vector<8x8xbf16>
      %c0_12 = arith.constant 0 : index
      %c0_13 = arith.constant 0 : index
      %c0_14 = arith.constant 0 : index
      %c0_15 = arith.constant 0 : index
      %23 = vector.load %arg5[%c0_12, %c0_13, %c0_14, %c0_15] : memref<1x1x8x8xbf16, #tpu.memory_space<vmem>>, vector<1x1x8x8xbf16>
      %24 = vector.shape_cast %23 : vector<1x1x8x8xbf16> to vector<8x8xbf16>
      %25 = vector.shape_cast %22 : vector<8x8xbf16> to vector<1x1x8x8xbf16>
      tpu.vector_store %arg5[%c0_12, %c0_13, %c0_14, %c0_15], %25 {strides = array<i32>} : memref<1x1x8x8xbf16, #tpu.memory_space<vmem>>, vector<1x1x8x8xbf16>,
    } else {
    }
    return
  }
  func.func @transform_0(%arg0: i32, %arg1: i32) -> (i32, i32, i32) {
    %c0_i32 = arith.constant 0 : i32
    %c0_i32_0 = arith.constant 0 : i32
    %c0_i32_1 = arith.constant 0 : i32
    return %arg0, %c0_i32, %c0_i32_0 : i32, i32, i32
  }
  func.func @transform_1(%arg0: i32, %arg1: i32) -> (i32, i32, i32) {
    %c0_i32 = arith.constant 0 : i32
    %c0_i32_0 = arith.constant 0 : i32
    %c0_i32_1 = arith.constant 0 : i32
    return %arg1, %c0_i32, %c0_i32_0 : i32, i32, i32
  }
  func.func @transform_2(%arg0: i32, %arg1: i32) -> (i32, i32, i32) {
    %c0_i32 = arith.constant 0 : i32
    %c0_i32_0 = arith.constant 0 : i32
    %c0_i32_1 = arith.constant 0 : i32
    return %arg1, %c0_i32, %c0_i32_0 : i32, i32, i32
  }
  func.func @transform_3(%arg0: i32, %arg1: i32) -> (i32, i32, i32, i32) {
    %c0_i32 = arith.constant 0 : i32
    %c0_i32_0 = arith.constant 0 : i32
    %c0_i32_1 = arith.constant 0 : i32
    return %arg1, %arg0, %c0_i32, %c0_i32_0 : i32, i32, i32, i32
  }
}

</mosaic_0001>

<bundles_post_ra>
// kernel: tpu_custom_call.1
= control target key start
LH: loop header
LB: loop body
LE: loop exit
PB: predicated region body
PF: predicated region fallthrough
CT: control target
= control target key end

     0   :  { %s579_s12 = smov 0   ;;  %s581_s13 = smov 0   ;;  %s655_s0 = inlined_call_operand.vmem [shape: f32[4,8,32], index: 0, kind: input, shape index: {}]   ;;  %s656_s1 = inlined_call_operand.vmem [shape: f32[12,32,8], index: 1, kind: input, shape index: {}]   ;;  %s657_s2 = inlined_call_operand.vmem [shape: f32[12,1,8], index: 2, kind: input, shape index: {}]   ;;  %s658_s3 = inlined_call_operand.vmem [shape: bf16[12,4,8,8], index: 3, kind: output, shape index: {}]  }
   0x1   :  { %s583_s14 = smov 0   ;;  %s585_s15 = smov 0  }
   0x2   :  { %s587_s16 = smov 0  }
   0x3 LB: > { %s22_s17 = sadd.s32 1, %s547_s14  ;;  %s25_s18 = sadd.s32 1, %s551_s15  ;;  %s555_s16 = sphi %s587_s16, %s13_s16   ;;  %s551_s15 = sphi %s585_s15, %s662_s15   ;;  %s547_s14 = sphi %s583_s14, %s661_s14   ;;  %s543_s13 = sphi %s581_s13, %s660_s13   ;;  %s539_s12 = sphi %s579_s12, %s659_s12  }
   0x4   : > { %p23_p0 = scmp.ge.s32.totalorder %s22_s17, 12  ;;  %p443_p1 = scmp.ge.s32.totalorder %s555_s16, 1 }
   0x5   : > { %p168_p2 = scmp.lt.s32.totalorder %s555_s16, 49 }
   0x6   : > { %s664_s17 = smov (%p23_p0, %s22_s17), 0  ;;  %s666_s18 = smov (!%p23_p0, %s25_s18), %s551_s15 }
   0x7   : > { %p169_p3 = pnand %p443_p1, %p168_p2  ;;  %p27_p4 = scmp.ge.s32.totalorder %s666_s18, 4 }
   0x8   : > { %p206_p5 = scmp.lt.s32.totalorder (!%p169_p3), %s539_s12, 11  ;;  %p202_p6 = scmp.lt.s32.totalorder (!%p169_p3), %s543_s13, 3  ;;  %v557_v0 = vmov (!%p169_p3), 0.0   ;;  %vm558_vm0 = vmmov (!%p169_p3), 0   ;;  %vm238_vm1 = vcmask (!%p169_p3), 261120  }
   0x9   : > { %s668_s18 = smov (%p27_p4, %s666_s18), 0  ;;  %172 = sbr.rel (%p169_p3) target bundleno = 631 (0x277), region = 32 }
   0xa   : > { %459 = vmatprep.subr.bf16.mxu0 (!%p169_p3), %v557_v0  ;;  %463 = vmatprep.mubr.msk.bf16.mxu0 (!%p169_p3), %vm558_vm0, %v557_v0  ;;  %p451_p7 = scmp.ge.s32.totalorder (!%p169_p3), %s539_s12, 4 }
  0x10   : > { %s207_s19 = scalar_select %p206_p5, %s539_s12, 11 }
  0x11   : > { %s670_s13 = smov (!%p202_p6, %s543_s13), 3  ;;  %vm286_vm2 = vcmask (!%p451_p7), 64512   ;;  %vm300_vm3 = vcmask (!%p451_p7), 60416  }
  0x12   : > { %s455_s20 = sshll.u32 %s207_s19, 5  ;;  %s447_s21 = sshll.u32 %s207_s19, 2 }
  0x13   : > { %s210_s24 = scalar_lea.vmem %s656_s1, %s455_s20  ;;  %s444_s25 = sshll.u32 %s670_s13, 3 }
  0x14   : > { %v225_v1 = vld [vmem:[%s210_s24] sm:$0xff]  ;;  %v226_v2 = vld [vmem:[%s210_s24 + $0x8] sm:$0xff]  ;;  %v227_v3 = vld [vmem:[%s210_s24 + $0x10] sm:$0xff]  ;;  %s205_s28 = scalar_lea.vmem %s655_s0, %s444_s25  ;;  %s219_s29 = sadd.s32 %s447_s21, %s670_s13 }
  0x15   : > { %v229_v4 = vpack.c.bf16 %v226_v2, %v225_v1  ;;  %v228_v5 = vld [vmem:[%s210_s24 + $0x18] sm:$0xff]  ;;  %s448_s30 = sshll.u32 %s219_s29, 2  ;;  %v223_v7 = vld [vmem:[%s205_s28] sm:$0xff]  ;;  %s213_s9 = scalar_lea.vmem %s657_s2, %s207_s19 }
  0x16   : > { %s622_s6 = scalar_lea.vmem %s658_s3, %s448_s30  ;;  %v230_v6 = vpack.c.bf16 %v228_v5, %v227_v3  ;;  %v224_v8 = vpack.c.bf16 %v223_v7, %v223_v7  ;;  %v449_v9 = vld [vmem:[%s213_s9] ss:$0 sm:$0xff] }
  0x17   : > { %460 = vmatpush3.bf16.msra.mxu0 %v229_v4 }
  0x18   : > { %461 = vmatprep.subr.bf16.mxu0 %v557_v0 }
  0x1b   : > { %462 = vmatpush3.bf16.msra.mxu0 %v230_v6 }
  0x1e   : > { %464 = vmatmul.mubr.msk.bf16.vlgmr.msra.gmra.mrb[0].mxu0 %vm238_vm1, %v224_v8 }
  0xee   : > { %285 = sbr.rel (%p451_p7) target bundleno = 563 (0x233), region = 36 }
  0xf1   : > { %v276_v10 = vpop.f32.mrb[0].mxu0 }
  0xf2   : > { %v277_v11 = vadd.f32 %v449_v9, %v276_v10  ;;  %v465_v12 = vpop.f32.mrb[1].mxu0 }
  0xf3   : > { %v279_v13 = vpop.f32.mrb[2].mxu0 }
  0xf4   : > { %v466_v14 = vpop.f32.mrb[3].mxu0  ;;  %v287_v15 = vsel (!%p451_p7), %vm286_vm2, %v277_v11, -inf }
  0xf5   : > { %288 = vmax.xlane.f32.xlu0 %v287_v15 }
 0x182   : > { %v289_v16 = vpop.xlane.xlu0 %288 }
 0x183   : > { %v290_v17 = vsub.f32 %v277_v11, %v289_v16 }
 0x185   : > { %v291_v18 = vmul.f32 1.442695, %v290_v17 }
 0x187   : > { %509 = vpow2.f32 %v291_v18 }
 0x191   : > { %v510_v19 = vpop.eup %509 }
 0x192   : > { %v293_v20 = vsel %vm286_vm2, %v510_v19, 0.0 }
 0x193   : > { %294 = vadd.xlane.f32.xlu0 %v293_v20 }
 0x220   : > { %v295_v21 = vpop.xlane.xlu0 %294 }
 0x221   : > { %511 = vrcp.f32 %v295_v21 }
 0x22b   : > { %v512_v22 = vpop.eup %511 }
 0x22c   : > { %v297_v23 = vmul.f32 0.17677669, %v512_v22 }
 0x22e   : > { %v298_v24 = vmul.f32 %v510_v19, %v297_v23 }
 0x230   : > { %v299_v25 = vpack.c.bf16 %v298_v24, %v298_v24 }
 0x232   : > { %301 = vst.msk [vmem:[%s622_s6] sm:$0xf] %vm300_vm3, %v299_v25 }
 0x233 PF: > { %p303_p8 = scmp.lt.s32.totalorder %s539_s12, 8 }
 0x235   : > { %p304_p9 = pnand %p451_p7, %p303_p8 }
 0x236   : > { %vm308_vm4 = vcmask (!%p304_p9), 64512   ;;  %vm329_vm5 = vcmask (!%p304_p9), 60416  }
 0x237   : > { %307 = sbr.rel (%p304_p9) target bundleno = 624 (0x270), region = 40  ;;  %v309_v26 = vsel (!%p304_p9), %vm308_vm4, %v277_v11, -inf }
 0x238   : > { %v310_v27 = vrot.slane (!%p304_p9), %v309_v26, 4 }
 0x23a   : > { %v311_v28 = vmax.f32 (!%p304_p9), %v309_v26, %v310_v27 }
 0x23c   : > { %v312_v29 = vrot.slane (!%p304_p9), %v311_v28, 2 }
 0x23e   : > { %v313_v30 = vmax.f32 %v311_v28, %v312_v29 }
 0x240   : > { %v314_v31 = vrot.slane %v313_v30, 1 }
 0x242   : > { %v315_v32 = vmax.f32 %v313_v30, %v314_v31 }
 0x244   : > { %v316_v33 = vsub.f32 %v277_v11, %v315_v32 }
 0x246   : > { %v317_v34 = vmul.f32 1.442695, %v316_v33 }
 0x248   : > { %513 = vpow2.f32 %v317_v34 }
 0x252   : > { %v514_v35 = vpop.eup %513 }
 0x253   : > { %v319_v36 = vsel %vm308_vm4, %v514_v35, 0.0 }
 0x254   : > { %v320_v37 = vrot.slane %v319_v36, 4 }
 0x256   : > { %v321_v38 = vadd.f32 %v320_v37, %v319_v36 }
 0x258   : > { %v322_v39 = vrot.slane %v321_v38, 2 }
 0x25a   : > { %v323_v40 = vadd.f32 %v322_v39, %v321_v38 }
 0x25c   : > { %v324_v41 = vrot.slane %v323_v40, 1 }
 0x25e   : > { %v325_v42 = vadd.f32 %v324_v41, %v323_v40 }
 0x260   : > { %515 = vrcp.f32 %v325_v42 }
 0x26a   : > { %v516_v43 = vpop.eup %515 }
 0x26b   : > { %v327_v44 = vmul.f32 %v516_v43, %v514_v35 }
 0x26d   : > { %v328_v45 = vpack.c.bf16 %v327_v44, %v327_v44 }
 0x26f   : > { %330 = vst.msk [vmem:[%s622_s6] sm:$0xf] %vm329_vm5, %v328_v45 }
 0x270 PF: > { %334 = sbr.rel (%p303_p8) target bundleno = 631 (0x277), region = 44  ;;  %v335_v46 = vpack.c.bf16 (!%p303_p8), %v277_v11, %v277_v11  ;;  %vm336_vm6 = vcmask (!%p303_p8), 60416  }
 0x272   : > { %337 = vst.msk [vmem:[%s622_s6] sm:$0xf] (!%p303_p8), %vm336_vm6, %v335_v46 }
 0x277 PF: > { %s13_s16 = sadd.s32 1, %s555_s16   ;;  %s659_s12 = smov %s547_s14 }
 0x278   : > { %p10_p10 = scmp.ge.s32.totalorder %s13_s16, 50   ;;  %s660_s13 = smov %s551_s15 }
 0x279   : > { %s661_s14 = smov %s664_s17  ;;  %s662_s15 = smov %s668_s18 }
 0x27a   :  { %12 = sbr.rel (!%p10_p10) target bundleno = 3 (0x3), region = 80 }

</bundles_post_ra>
